<compile_context>
chip_gen: v7x
topology: tpu7x:2x2x1
jax: 0.10.0
libtpu: 0.0.40
codegen_flags: <defaults>
</compile_context>

<pallas_src>
import functools

import jax
import jax.numpy as jnp
from jax.experimental import pallas as pl
from jax.experimental.pallas import tpu as pltpu


def _residual_block_kernel(x_ref, w1_ref, b1_ref, w2_ref, b2_ref, out_ref,
                           *, PC, H, W):
    """One packed block: PC = (images_per_block * C) sublane rows, S = H*W lanes."""
    S = H * W
    x = x_ref[...]                      # (PC, S) f32; also the residual
    w1 = w1_ref[...]                    # (PC, 9*PC) block-diagonal im2col weights
    w2 = w2_ref[...]
    b1 = b1_ref[...]                    # (PC, 1)
    b2 = b2_ref[...]

    # ---- boundary masks, hoisted once and reused by both convs -------------
    # Lane index s in [0, S); spatial (row, col) = (s // W, s % W).  Row masks
    # need no division at all; column masks use bit-ops for power-of-two W.
    lane = jax.lax.broadcasted_iota(jnp.int32, (PC, S), 1)
    if (W & (W - 1)) == 0:
        col = jnp.bitwise_and(lane, W - 1)
    else:
        col = lane % W  # TODO(synk): verify Mosaic vector rem lowering for non-pow2 W.
    not_left = col != 0
    not_right = col != (W - 1)
    not_top = lane >= W              # row > 0
    not_bot = lane < (S - W)         # row < H - 1

    row_masks = (not_top, None, not_bot)      # kh = 0, 1, 2
    col_masks = (not_left, None, not_right)   # kw = 0, 1, 2
    masks = []
    for kh in range(3):
        for kw in range(3):
            mr, mc = row_masks[kh], col_masks[kw]
            if mr is None:
                masks.append(mc)
            elif mc is None:
                masks.append(mr)
            else:
                masks.append(jnp.logical_and(mr, mc))   # corner taps

    def im2col(v):
        """3x3 'same' taps via pltpu.roll + mask; returns (9*PC, S) stack.

        tap[s] = v[s + d] with d = (kh-1)*W + (kw-1).  The roll is circular, but
        every wrapped / wrong-row position is exactly one that the row/col
        boundary masks zero out, so the result equals zero-padded 'same' conv taps.
        """
        taps = []
        for kh in range(3):
            for kw in range(3):
                d = (kh - 1) * W + (kw - 1)
                t = v if d == 0 else pltpu.roll(v, shift=(-d) % S, axis=1)
                m = masks[kh * 3 + kw]
                if m is not None:
                    t = jnp.where(m, t, 0.0)
                taps.append(t)
        return jnp.concatenate(taps, axis=0)          # (9*PC, S), tile-aligned rows

    # conv1 + bias + ReLU (intermediate never leaves vregs / VMEM).
    y = jnp.maximum(
        jnp.dot(w1, im2col(x), preferred_element_type=jnp.float32) + b1, 0.0)
    # conv2 + bias + residual + ReLU.
    z = jnp.dot(w2, im2col(y), preferred_element_type=jnp.float32) + b2 + x
    out_ref[...] = jnp.maximum(z, 0.0).astype(out_ref.dtype)


def residual_block_forward(x_nchw, w1, b1, w2, b2):
    """Pallas ResidualBlock.forward.

    x_nchw: (N, C, H, W) f32; w1, w2: (C, C, 3, 3) OIHW; b1, b2: (C,).
    """
    N, C, H, W = x_nchw.shape
    S = H * W

    # f32 vregs are (8 sublane, 128 lane): pack P = 8 // C images per grid step so
    # all vector work uses full sublanes.  (For the toy N=2 this makes grid=(1,);
    # at production batch sizes the parallel grid still has many steps per core.)
    P = 8 // C if (C < 8 and 8 % C == 0 and N % (8 // C) == 0) else 1
    PC = P * C
    NB = N // P

    x = x_nchw.reshape(NB, PC, S)       # contiguous -> free reshape, stays NCHW

    def pack_weights(w):
        # OIHW -> (C_out, kh, kw, C_in) -> (C_out, 9, C_in), then block-diagonal
        # over the P packed images so ONE (PC, 9*PC) @ (9*PC, S) MXU matmul per
        # conv handles the whole packed block.  Tiny one-time host-side op.
        w_k = jnp.transpose(w, (0, 2, 3, 1)).reshape(C, 9, C)
        eye = jnp.eye(P, dtype=w.dtype)
        wb = jnp.einsum("pq,okc->pokqc", eye, w_k)      # (P, C, 9, P, C)
        return wb.reshape(PC, 9 * PC)

    w1_big = pack_weights(w1)
    w2_big = pack_weights(w2)
    b1_big = jnp.tile(b1, P).reshape(PC, 1)
    b2_big = jnp.tile(b2, P).reshape(PC, 1)

    kernel = functools.partial(_residual_block_kernel, PC=PC, H=H, W=W)

    out = pl.pallas_call(
        kernel,
        out_shape=jax.ShapeDtypeStruct((NB, PC, S), x_nchw.dtype),
        grid_spec=pltpu.PrefetchScalarGridSpec(
            num_scalar_prefetch=0,
            grid=(NB,),
            in_specs=[
                pl.BlockSpec((None, PC, S), lambda n: (n, 0, 0)),   # x (per block)
                pl.BlockSpec((PC, 9 * PC), lambda n: (0, 0)),       # w1 (resident)
                pl.BlockSpec((PC, 1), lambda n: (0, 0)),            # b1
                pl.BlockSpec((PC, 9 * PC), lambda n: (0, 0)),       # w2
                pl.BlockSpec((PC, 1), lambda n: (0, 0)),            # b2
            ],
            out_specs=pl.BlockSpec((None, PC, S), lambda n: (n, 0, 0)),
        ),
        compiler_params=pltpu.CompilerParams(
            dimension_semantics=("parallel",),
        ),
    )(x, w1_big, b1_big, w2_big, b2_big)

    return out.reshape(N, C, H, W)


def _reference(x, w1, b1, w2, b2):
    dn = ("NCHW", "OIHW", "NCHW")
    y = jax.lax.conv_general_dilated(x, w1, (1, 1), "SAME", dimension_numbers=dn,
                                     precision=jax.lax.Precision.HIGHEST)
    y = jnp.maximum(y + b1.reshape(1, -1, 1, 1), 0.0)
    y = jax.lax.conv_general_dilated(y, w2, (1, 1), "SAME", dimension_numbers=dn,
                                     precision=jax.lax.Precision.HIGHEST)
    y = y + b2.reshape(1, -1, 1, 1)
    return jnp.maximum(x + y, 0.0)


if __name__ == "__main__":
    N, C, H, W = 2, 4, 16, 16

    key = jax.random.PRNGKey(0)
    kx, kw1, kb1, kw2, kb2 = jax.random.split(key, 5)

    x = jax.random.normal(kx, (N, C, H, W), dtype=jnp.float32)
    # Deterministic synthetic params (shapes match nn.Conv2d(C, C, 3, padding=1)).
    w1 = jax.random.normal(kw1, (C, C, 3, 3), dtype=jnp.float32) * 0.1
    b1 = jax.random.normal(kb1, (C,), dtype=jnp.float32) * 0.1
    w2 = jax.random.normal(kw2, (C, C, 3, 3), dtype=jnp.float32) * 0.1
    b2 = jax.random.normal(kb2, (C,), dtype=jnp.float32) * 0.1

    out = jax.jit(residual_block_forward)(x, w1, b1, w2, b2)
    out = jax.block_until_ready(out)

    ref = _reference(x, w1, b1, w2, b2)
    assert out.shape == (N, C, H, W)
    # Tolerance allows for MXU multi-pass f32 matmul vs the XLA conv reference;
    # any algorithmic error (roll direction / mask / weight layout) is O(0.1+).
    assert jnp.allclose(out, ref, atol=1e-3, rtol=1e-3), "mismatch vs XLA conv reference"

    print("KERNEL_OK")
</pallas_src>

<mosaic_0001>
module attributes {stable_mosaic.version = 11 : i64} {
  func.func @_residual_block_kernel(%arg0: i32, %arg1: memref<1x8x256xf32, #tpu.memory_space<vmem>>, %arg2: memref<8x72xf32, #tpu.memory_space<vmem>>, %arg3: memref<8x1xf32, #tpu.memory_space<vmem>>, %arg4: memref<8x72xf32, #tpu.memory_space<vmem>>, %arg5: memref<8x1xf32, #tpu.memory_space<vmem>>, %arg6: memref<1x8x256xf32, #tpu.memory_space<vmem>>) attributes {dimension_semantics = [#tpu.dimension_semantics<parallel>], iteration_bounds = array<i64: 1>, scalar_prefetch = 0 : i64, scratch_operands = 0 : i64, tpu.core_type = #tpu.core_type<tc>, window_params = [{transform_indices = @transform_0, window_bounds = array<i64: 1, 8, 256>}, {pipeline_mode = #tpu.pipeline_mode<synchronous>, transform_indices = @transform_1, window_bounds = array<i64: 8, 72>}, {pipeline_mode = #tpu.pipeline_mode<synchronous>, transform_indices = @transform_2, window_bounds = array<i64: 8, 1>}, {pipeline_mode = #tpu.pipeline_mode<synchronous>, transform_indices = @transform_3, window_bounds = array<i64: 8, 72>}, {pipeline_mode = #tpu.pipeline_mode<synchronous>, transform_indices = @transform_4, window_bounds = array<i64: 8, 1>}, {transform_indices = @transform_5, window_bounds = array<i64: 1, 8, 256>}]} {
    %c0 = arith.constant 0 : index
    %c0_0 = arith.constant 0 : index
    %c0_1 = arith.constant 0 : index
    %0 = vector.load %arg1[%c0, %c0_0, %c0_1] : memref<1x8x256xf32, #tpu.memory_space<vmem>>, vector<1x8x256xf32>
    %1 = vector.shape_cast %0 : vector<1x8x256xf32> to vector<8x256xf32>
    %c0_2 = arith.constant 0 : index
    %c0_3 = arith.constant 0 : index
    %2 = vector.load %arg2[%c0_2, %c0_3] : memref<8x72xf32, #tpu.memory_space<vmem>>, vector<8x72xf32>
    %c0_4 = arith.constant 0 : index
    %c0_5 = arith.constant 0 : index
    %3 = vector.load %arg4[%c0_4, %c0_5] : memref<8x72xf32, #tpu.memory_space<vmem>>, vector<8x72xf32>
    %c0_6 = arith.constant 0 : index
    %c0_7 = arith.constant 0 : index
    %4 = vector.load %arg3[%c0_6, %c0_7] : memref<8x1xf32, #tpu.memory_space<vmem>>, vector<8x1xf32>
    %c0_8 = arith.constant 0 : index
    %c0_9 = arith.constant 0 : index
    %5 = vector.load %arg5[%c0_8, %c0_9] : memref<8x1xf32, #tpu.memory_space<vmem>>, vector<8x1xf32>
    %6 = tpu.iota {dimensions = array<i32: 1>} : vector<8x256xi32>
    %c15_i32 = arith.constant 15 : i32
    %7 = vector.broadcast %c15_i32 : i32 to vector<8x256xi32>
    %8 = arith.andi %6, %7 : vector<8x256xi32>
    %c0_i32 = arith.constant 0 : i32
    %9 = vector.broadcast %c0_i32 : i32 to vector<8x256xi32>
    %10 = arith.cmpi ne, %8, %9 : vector<8x256xi32>
    %c15_i32_10 = arith.constant 15 : i32
    %11 = vector.broadcast %c15_i32_10 : i32 to vector<8x256xi32>
    %12 = arith.cmpi ne, %8, %11 : vector<8x256xi32>
    %c16_i32 = arith.constant 16 : i32
    %13 = vector.broadcast %c16_i32 : i32 to vector<8x256xi32>
    %14 = arith.cmpi sge, %6, %13 : vector<8x256xi32>
    %c240_i32 = arith.constant 240 : i32
    %15 = vector.broadcast %c240_i32 : i32 to vector<8x256xi32>
    %16 = arith.cmpi slt, %6, %15 : vector<8x256xi32>
    %17 = arith.andi %14, %10 : vector<8x256xi1>
    %18 = arith.andi %14, %12 : vector<8x256xi1>
    %19 = arith.andi %16, %10 : vector<8x256xi1>
    %20 = arith.andi %16, %12 : vector<8x256xi1>
    %c17_i32 = arith.constant 17 : i32
    %21 = tpu.dynamic_rotate %1 by %c17_i32 dim 1 : vector<8x256xf32>, i32 -> vector<8x256xf32>
    %cst = arith.constant 0.000000e+00 : f32
    %22 = vector.broadcast %cst : f32 to vector<8x256xf32>
    %23 = arith.select %17, %21, %22 : vector<8x256xi1>, vector<8x256xf32>
    %c16_i32_11 = arith.constant 16 : i32
    %24 = tpu.dynamic_rotate %1 by %c16_i32_11 dim 1 : vector<8x256xf32>, i32 -> vector<8x256xf32>
    %cst_12 = arith.constant 0.000000e+00 : f32
    %25 = vector.broadcast %cst_12 : f32 to vector<8x256xf32>
    %26 = arith.select %14, %24, %25 : vector<8x256xi1>, vector<8x256xf32>
    %c15_i32_13 = arith.constant 15 : i32
    %27 = tpu.dynamic_rotate %1 by %c15_i32_13 dim 1 : vector<8x256xf32>, i32 -> vector<8x256xf32>
    %cst_14 = arith.constant 0.000000e+00 : f32
    %28 = vector.broadcast %cst_14 : f32 to vector<8x256xf32>
    %29 = arith.select %18, %27, %28 : vector<8x256xi1>, vector<8x256xf32>
    %c1_i32 = arith.constant 1 : i32
    %30 = tpu.dynamic_rotate %1 by %c1_i32 dim 1 : vector<8x256xf32>, i32 -> vector<8x256xf32>
    %cst_15 = arith.constant 0.000000e+00 : f32
    %31 = vector.broadcast %cst_15 : f32 to vector<8x256xf32>
    %32 = arith.select %10, %30, %31 : vector<8x256xi1>, vector<8x256xf32>
    %c255_i32 = arith.constant 255 : i32
    %33 = tpu.dynamic_rotate %1 by %c255_i32 dim 1 : vector<8x256xf32>, i32 -> vector<8x256xf32>
    %cst_16 = arith.constant 0.000000e+00 : f32
    %34 = vector.broadcast %cst_16 : f32 to vector<8x256xf32>
    %35 = arith.select %12, %33, %34 : vector<8x256xi1>, vector<8x256xf32>
    %c241_i32 = arith.constant 241 : i32
    %36 = tpu.dynamic_rotate %1 by %c241_i32 dim 1 : vector<8x256xf32>, i32 -> vector<8x256xf32>
    %cst_17 = arith.constant 0.000000e+00 : f32
    %37 = vector.broadcast %cst_17 : f32 to vector<8x256xf32>
    %38 = arith.select %19, %36, %37 : vector<8x256xi1>, vector<8x256xf32>
    %c240_i32_18 = arith.constant 240 : i32
    %39 = tpu.dynamic_rotate %1 by %c240_i32_18 dim 1 : vector<8x256xf32>, i32 -> vector<8x256xf32>
    %cst_19 = arith.constant 0.000000e+00 : f32
    %40 = vector.broadcast %cst_19 : f32 to vector<8x256xf32>
    %41 = arith.select %16, %39, %40 : vector<8x256xi1>, vector<8x256xf32>
    %c239_i32 = arith.constant 239 : i32
    %42 = tpu.dynamic_rotate %1 by %c239_i32 dim 1 : vector<8x256xf32>, i32 -> vector<8x256xf32>
    %cst_20 = arith.constant 0.000000e+00 : f32
    %43 = vector.broadcast %cst_20 : f32 to vector<8x256xf32>
    %44 = arith.select %20, %42, %43 : vector<8x256xi1>, vector<8x256xf32>
    %45 = tpu.concatenate %23, %26, %29, %32, %1, %35, %38, %41, %44 in 0 : vector<8x256xf32>, vector<8x256xf32>, vector<8x256xf32>, vector<8x256xf32>, vector<8x256xf32>, vector<8x256xf32>, vector<8x256xf32>, vector<8x256xf32>, vector<8x256xf32> -> vector<72x256xf32>
    %cst_21 = arith.constant dense<0.000000e+00> : vector<8x256xf32>
    %46 = tpu.matmul %2, %45, %cst_21 {dimension_numbers = #tpu.dot_dimension_numbers<[1], [0], [0], [1], [0, 0, 1, 1], [], []>} : vector<8x72xf32>, vector<72x256xf32>, vector<8x256xf32> -> vector<8x256xf32>
    %47 = vector.broadcast %4 : vector<8x1xf32> to vector<8x256xf32>
    %48 = arith.addf %46, %47 : vector<8x256xf32>
    %cst_22 = arith.constant 0.000000e+00 : f32
    %49 = vector.broadcast %cst_22 : f32 to vector<8x256xf32>
    %50 = arith.maximumf %48, %49 : vector<8x256xf32>
    %c17_i32_23 = arith.constant 17 : i32
    %51 = tpu.dynamic_rotate %50 by %c17_i32_23 dim 1 : vector<8x256xf32>, i32 -> vector<8x256xf32>
    %cst_24 = arith.constant 0.000000e+00 : f32
    %52 = vector.broadcast %cst_24 : f32 to vector<8x256xf32>
    %53 = arith.select %17, %51, %52 : vector<8x256xi1>, vector<8x256xf32>
    %c16_i32_25 = arith.constant 16 : i32
    %54 = tpu.dynamic_rotate %50 by %c16_i32_25 dim 1 : vector<8x256xf32>, i32 -> vector<8x256xf32>
    %cst_26 = arith.constant 0.000000e+00 : f32
    %55 = vector.broadcast %cst_26 : f32 to vector<8x256xf32>
    %56 = arith.select %14, %54, %55 : vector<8x256xi1>, vector<8x256xf32>
    %c15_i32_27 = arith.constant 15 : i32
    %57 = tpu.dynamic_rotate %50 by %c15_i32_27 dim 1 : vector<8x256xf32>, i32 -> vector<8x256xf32>
    %cst_28 = arith.constant 0.000000e+00 : f32
    %58 = vector.broadcast %cst_28 : f32 to vector<8x256xf32>
    %59 = arith.select %18, %57, %58 : vector<8x256xi1>, vector<8x256xf32>
    %c1_i32_29 = arith.constant 1 : i32
    %60 = tpu.dynamic_rotate %50 by %c1_i32_29 dim 1 : vector<8x256xf32>, i32 -> vector<8x256xf32>
    %cst_30 = arith.constant 0.000000e+00 : f32
    %61 = vector.broadcast %cst_30 : f32 to vector<8x256xf32>
    %62 = arith.select %10, %60, %61 : vector<8x256xi1>, vector<8x256xf32>
    %c255_i32_31 = arith.constant 255 : i32
    %63 = tpu.dynamic_rotate %50 by %c255_i32_31 dim 1 : vector<8x256xf32>, i32 -> vector<8x256xf32>
    %cst_32 = arith.constant 0.000000e+00 : f32
    %64 = vector.broadcast %cst_32 : f32 to vector<8x256xf32>
    %65 = arith.select %12, %63, %64 : vector<8x256xi1>, vector<8x256xf32>
    %c241_i32_33 = arith.constant 241 : i32
    %66 = tpu.dynamic_rotate %50 by %c241_i32_33 dim 1 : vector<8x256xf32>, i32 -> vector<8x256xf32>
    %cst_34 = arith.constant 0.000000e+00 : f32
    %67 = vector.broadcast %cst_34 : f32 to vector<8x256xf32>
    %68 = arith.select %19, %66, %67 : vector<8x256xi1>, vector<8x256xf32>
    %c240_i32_35 = arith.constant 240 : i32
    %69 = tpu.dynamic_rotate %50 by %c240_i32_35 dim 1 : vector<8x256xf32>, i32 -> vector<8x256xf32>
    %cst_36 = arith.constant 0.000000e+00 : f32
    %70 = vector.broadcast %cst_36 : f32 to vector<8x256xf32>
    %71 = arith.select %16, %69, %70 : vector<8x256xi1>, vector<8x256xf32>
    %c239_i32_37 = arith.constant 239 : i32
    %72 = tpu.dynamic_rotate %50 by %c239_i32_37 dim 1 : vector<8x256xf32>, i32 -> vector<8x256xf32>
    %cst_38 = arith.constant 0.000000e+00 : f32
    %73 = vector.broadcast %cst_38 : f32 to vector<8x256xf32>
    %74 = arith.select %20, %72, %73 : vector<8x256xi1>, vector<8x256xf32>
    %75 = tpu.concatenate %53, %56, %59, %62, %50, %65, %68, %71, %74 in 0 : vector<8x256xf32>, vector<8x256xf32>, vector<8x256xf32>, vector<8x256xf32>, vector<8x256xf32>, vector<8x256xf32>, vector<8x256xf32>, vector<8x256xf32>, vector<8x256xf32> -> vector<72x256xf32>
    %cst_39 = arith.constant dense<0.000000e+00> : vector<8x256xf32>
    %76 = tpu.matmul %3, %75, %cst_39 {dimension_numbers = #tpu.dot_dimension_numbers<[1], [0], [0], [1], [0, 0, 1, 1], [], []>} : vector<8x72xf32>, vector<72x256xf32>, vector<8x256xf32> -> vector<8x256xf32>
    %77 = vector.broadcast %5 : vector<8x1xf32> to vector<8x256xf32>
    %78 = arith.addf %76, %77 : vector<8x256xf32>
    %79 = arith.addf %78, %1 : vector<8x256xf32>
    %cst_40 = arith.constant 0.000000e+00 : f32
    %80 = vector.broadcast %cst_40 : f32 to vector<8x256xf32>
    %81 = arith.maximumf %79, %80 : vector<8x256xf32>
    %c0_41 = arith.constant 0 : index
    %c0_42 = arith.constant 0 : index
    %c0_43 = arith.constant 0 : index
    %82 = vector.load %arg6[%c0_41, %c0_42, %c0_43] : memref<1x8x256xf32, #tpu.memory_space<vmem>>, vector<1x8x256xf32>
    %83 = vector.shape_cast %82 : vector<1x8x256xf32> to vector<8x256xf32>
    %84 = vector.shape_cast %81 : vector<8x256xf32> to vector<1x8x256xf32>
    tpu.vector_store %arg6[%c0_41, %c0_42, %c0_43], %84 {strides = array<i32>} : memref<1x8x256xf32, #tpu.memory_space<vmem>>, vector<1x8x256xf32>,
    return
  }
  func.func @transform_0(%arg0: i32) -> (i32, i32, i32) {
    %c0_i32 = arith.constant 0 : i32
    %c0_i32_0 = arith.constant 0 : i32
    %c0_i32_1 = arith.constant 0 : i32
    return %arg0, %c0_i32, %c0_i32_0 : i32, i32, i32
  }
  func.func @transform_1(%arg0: i32) -> (i32, i32) {
    %c0_i32 = arith.constant 0 : i32
    %c0_i32_0 = arith.constant 0 : i32
    %c0_i32_1 = arith.constant 0 : i32
    return %c0_i32, %c0_i32_0 : i32, i32
  }
  func.func @transform_2(%arg0: i32) -> (i32, i32) {
    %c0_i32 = arith.constant 0 : i32
    %c0_i32_0 = arith.constant 0 : i32
    %c0_i32_1 = arith.constant 0 : i32
    return %c0_i32, %c0_i32_0 : i32, i32
  }
  func.func @transform_3(%arg0: i32) -> (i32, i32) {
    %c0_i32 = arith.constant 0 : i32
    %c0_i32_0 = arith.constant 0 : i32
    %c0_i32_1 = arith.constant 0 : i32
    return %c0_i32, %c0_i32_0 : i32, i32
  }
  func.func @transform_4(%arg0: i32) -> (i32, i32) {
    %c0_i32 = arith.constant 0 : i32
    %c0_i32_0 = arith.constant 0 : i32
    %c0_i32_1 = arith.constant 0 : i32
    return %c0_i32, %c0_i32_0 : i32, i32
  }
  func.func @transform_5(%arg0: i32) -> (i32, i32, i32) {
    %c0_i32 = arith.constant 0 : i32
    %c0_i32_0 = arith.constant 0 : i32
    %c0_i32_1 = arith.constant 0 : i32
    return %arg0, %c0_i32, %c0_i32_0 : i32, i32, i32
  }
}

</mosaic_0001>

<bundles_post_ra>
// kernel: tile.13
= control target key start
LH: loop header
LB: loop body
LE: loop exit
PB: predicated region body
PF: predicated region fallthrough
CT: control target
= control target key end

     0   :  { %s22_s0 = inlined_call_operand.vmem [shape: f32[4], index: 0, kind: input, shape index: {}]   ;;  %s23_s1 = inlined_call_operand.vmem [shape: f32[2,4], index: 1, kind: output, shape index: {}]  }
   0x1   :  { %v4_v0 = vld [vmem:[%s22_s0] ss:$0 sm:$0xff] }
   0x2   :  { %5 = vst [vmem:[%s23_s1] sm:$0x3] %v4_v0 }

// kernel: tile.0
= control target key start
LH: loop header
LB: loop body
LE: loop exit
PB: predicated region body
PF: predicated region fallthrough
CT: control target
= control target key end

     0   :  { %s34_s8 = smov 125   ;;  %vm7_vm0 = vcmask 7168   ;;  %s35_s11 = smov 126   ;;  %s61_s0 = inlined_call_operand.vmem [shape: f32[2,4], index: 0, kind: input, shape index: {}]   ;;  %s62_s1 = inlined_call_operand.vmem [shape: f32[8,1], index: 1, kind: output, shape index: {}]  }
   0x1   :  { %v4_v0 = vld [vmem:[%s61_s0] sm:$0x3]  ;;  %s33_s0 = smov 127  }
   0x2   :  { %5 = vst [vmem:[#allocation0] sm:$0x3] %v4_v0 }
   0x9   :  { %v9_v1 = vld [vmem:[#allocation0] sm:$0x3]  }
   0xa   :  { %v21_v2 = vld [vmem:[#allocation0] sm:$0x3]   ;;  %10 = vrot.lane.b32.xlu0 %v9_v1, %s33_s0 }
   0xb   :  { %22 = vrot.lane.b32.xlu1 %v21_v2, %s34_s8  ;;  %v6_v3 = vld [vmem:[#allocation0] sm:$0x3]  }
   0xc   :  { %v15_v4 = vld [vmem:[#allocation0] sm:$0x3]   ;;  %8 = vst.msk [vmem:[%s62_s1] ss:$4 sm:$0x3] %vm7_vm0, %v6_v3  }
   0xe   :  { %16 = vrot.lane.b32.xlu0 %v15_v4, %s35_s11 }
  0x7c   :  { %v11_v5 = vpop.permute.xlu0 %10  }
  0x7d   :  { %v23_v6 = vpop.permute.xlu1 %22   ;;  %27 = vst.msk [vmem:[%s62_s1 + $0x1] ss:$4 sm:$0x3] %vm7_vm0, %v11_v5  }
  0x7e   :  { %29 = vst.msk [vmem:[%s62_s1 + $0x3] ss:$4 sm:$0x3] %vm7_vm0, %v23_v6  }
  0x80   :  { %v17_v7 = vpop.permute.xlu0 %16  }
  0x81   :  { %28 = vst.msk [vmem:[%s62_s1 + $0x2] ss:$4 sm:$0x3] %vm7_vm0, %v17_v7  }

// kernel: residual_block_forward.1
= control target key start
LH: loop header
LB: loop body
LE: loop exit
PB: predicated region body
PF: predicated region fallthrough
CT: control target
= control target key end

     0   :  { %s515_s22 = smov 15   ;;  %s516_s23 = smov 17   ;;  %v523_v3 = vmov 0.0   ;;  %v524_v4 = vmov 0   ;;  %v26_v6 = vlaneseq  ;;  %vm525_vm9 = vmmov 1   ;;  %s839_s0 = inlined_call_operand.vmem [shape: f32[1,8,256], index: 0, kind: input, shape index: {}]   ;;  %s840_s2 = inlined_call_operand.vmem [shape: f32[8,1], index: 2, kind: input, shape index: {}]   ;;  %s841_s1 = inlined_call_operand.vmem [shape: f32[8,72], index: 1, kind: input, shape index: {}]   ;;  %s842_s4 = inlined_call_operand.vmem [shape: f32[8,1], index: 4, kind: input, shape index: {}]   ;;  %s843_s3 = inlined_call_operand.vmem [shape: f32[8,72], index: 3, kind: input, shape index: {}]   ;;  %s844_s5 = inlined_call_operand.vmem [shape: f32[1,8,256], index: 5, kind: output, shape index: {}]  }
   0x1   :  { %v559_v0 = vld [vmem:[%s839_s0] sm:$0xff]  ;;  %v564_v1 = vld [vmem:[%s839_s0 + $0x8] sm:$0xff]  ;;  %s517_s24 = smov 1   ;;  %s518_s25 = smov 16   ;;  %192 = vmatprep.mubr.f32.mxu0 %v523_v3  ;;  %337 = vmatprep.mubr.f32.mxu1 %v523_v3 }
   0x2   :  { %v453_v2 = vpack.i.bf16 %v564_v1, %v559_v0  ;;  %s519_s26 = smov 127   ;;  %s520_s0 = smov 113   ;;  %478 = vset.pattern.permute.xlu1 %v524_v4  ;;  %v24_v5 = vld [vmem:[%s840_s2] sm:$0xff]  ;;  %514 = vset.pattern.permute.xlu0 %v524_v4  ;;  %v582_v7 = vand.u32 127, %v26_v6 }
   0x3   :  { %s521_s27 = smov 112   ;;  %s522_s28 = smov 111   ;;  %v25_v21 = vld [vmem:[%s842_s4] sm:$0xff] }
   0x4   :  { %454 = vrot.lane.b32.xlu1 %v453_v2, %s515_s22  ;;  %444 = vrot.lane.b32.xlu0 %v453_v2, %s516_s23  ;;  %v585_v8 = vadd.s32 128, %v582_v7  ;;  %v29_v9 = vand.u32 15, %v582_v7  ;;  %vm35_vm1 = vcmp.ge.s32.totalorder %v582_v7, 16  ;;  %vm845_vm2 = vcmp.lt.s32.totalorder %v582_v7, 15  ;;  %v23_v62 = vld [vmem:[%s843_s3] sm:$0xff] }
   0x5   :  { %vm51_vm4 = vcmp.lt.s32.totalorder %v582_v7, 17  ;;  %vm846_vm5 = vcmp.lt.s32.totalorder %v582_v7, 1  ;;  %vm849_vm6 = vcmp.lt.s32.totalorder %v582_v7, 16  ;;  %vm847_vm13 = vcmp.lt.s32.totalorder %v582_v7, 127 }
   0x6   :  { %v30_v10 = vand.u32 15, %v585_v8  ;;  %vm589_vm0 = vcmp.ne.s32.totalorder %v29_v9, 0  ;;  %vm625_vm11 = vcmp.ne.s32.totalorder %v29_v9, 15 }
   0x7   :  { %vm606_vm7 = vmand %vm35_vm1, %vm589_vm0 }
   0x8   :  { %459 = vrot.lane.b32.xlu1 %v453_v2, %s517_s24  ;;  %449 = vrot.lane.b32.xlu0 %v453_v2, %s518_s25  ;;  %vm595_vm3 = vcmp.ne.s32.totalorder %v30_v10, 0  ;;  %vm610_vm8 = vcmp.ne.s32.totalorder %v30_v10, 15  ;;  %vm641_vm12 = vmpackc.low %vm35_vm1, %vm606_vm7  ;;  %vm852_vm7 = vcmp.lt.s32.totalorder %v582_v7, 113 }
   0x9   :  { %vm621_vm10 = vmpackc.low %vm525_vm9, %vm595_vm3 }
   0xa   :  { %vm848_vm14 = vmpackc.low %vm595_vm3, %vm610_vm8 }
   0xb   :  { %vm654_vm15 = vmand %vm35_vm1, %vm625_vm11  ;;  %vm38_vm1 = vcmp.lt.s32.totalorder %v585_v8, 240 }
   0xc   :  { %464 = vrot.lane.b32.xlu0 %v453_v2, %s519_s26  ;;  %469 = vrot.lane.b32.xlu1 %v453_v2, %s520_s0 }
  0x10   :  { %474 = vrot.lane.b32.xlu0 %v453_v2, %s521_s27  ;;  %110 = vrot.lane.b32.xlu1 %v559_v0, %s522_s28 }
  0x14   :  { %112 = vrot.lane.b32.xlu0 %v564_v1, %s522_s28  ;;  %121 = vperm.xlu1 %478, %v24_v5  }
  0x76   :  { %v455_v11 = vpop.permute.xlu1 %454  ;;  %v445_v12 = vpop.permute.xlu0 %444 }
  0x77   :  { %v457_v14 = vunpack.i.h.bf16 %v455_v11  ;;  %v456_v15 = vunpack.i.l.bf16 %v455_v11  ;;  %v447_v16 = vunpack.i.h.bf16 %v445_v12  ;;  %v446_v17 = vunpack.i.l.bf16 %v445_v12  ;;  %v22_v11 = vld [vmem:[%s841_s1] sm:$0xff] }
  0x79   :  { %v70_v27 = vsel %vm845_vm2, %v456_v15, %v457_v14  ;;  %v52_v28 = vsel %vm51_vm4, %v446_v17, %v447_v16  ;;  %v53_v33 = vsel %vm51_vm4, %v447_v16, %v446_v17  ;;  %v71_v45 = vsel %vm845_vm2, %v457_v14, %v456_v15  ;;  %vm850_vm2 = vmpackc.low %vm589_vm0, %vm654_vm15 }
  0x7a   :  { %v460_v19 = vpop.permute.xlu1 %459  ;;  %v450_v20 = vpop.permute.xlu0 %449 }
  0x7b   :  { %v462_v23 = vunpack.i.h.bf16 %v460_v19  ;;  %v461_v24 = vunpack.i.l.bf16 %v460_v19  ;;  %v452_v25 = vunpack.i.h.bf16 %v450_v20  ;;  %v451_v26 = vunpack.i.l.bf16 %v450_v20 }
  0x7d   :  { %v79_v31 = vsel %vm846_vm5, %v461_v24, %v462_v23  ;;  %v61_v32 = vsel %vm849_vm6, %v451_v26, %v452_v25  ;;  %v62_v34 = vsel %vm849_vm6, %v452_v25, %v451_v26  ;;  %v80_v46 = vsel %vm846_vm5, %v462_v23, %v461_v24  ;;  %vm713_vm6 = vmpackc.low %vm625_vm11, %vm525_vm9 }
  0x7e   :  { %v384_v36 = vpack.c.bf16 %v61_v32, %v52_v28  ;;  %v387_v37 = vpack.c.bf16 %v62_v34, %v53_v33  ;;  %v465_v38 = vpop.permute.xlu0 %464  ;;  %v470_v39 = vpop.permute.xlu1 %469  ;;  %v390_v47 = vpack.c.bf16 %v79_v31, %v70_v27  ;;  %vm851_vm5 = vcmp.lt.s32.totalorder %v582_v7, 112 }
  0x7f   :  { %v467_v40 = vunpack.i.h.bf16 %v465_v38  ;;  %v466_v41 = vunpack.i.l.bf16 %v465_v38  ;;  %v472_v43 = vunpack.i.h.bf16 %v470_v39  ;;  %v471_v44 = vunpack.i.l.bf16 %v470_v39 }
  0x80   :  { %386 = vmatprep.subr.msk.bf16.mxu0 %vm621_vm10, %v384_v36  ;;  %v393_v52 = vpack.c.bf16 %v80_v46, %v71_v45 }
  0x81   :  { %389 = vmatpush1.bf16.msk.msra.mxu0 %vm641_vm12, %v387_v37  ;;  %v89_v48 = vsel %vm847_vm13, %v467_v40, %v466_v41  ;;  %v88_v49 = vsel %vm847_vm13, %v466_v41, %v467_v40  ;;  %v98_v53 = vsel %vm852_vm7, %v472_v43, %v471_v44  ;;  %vm688_vm13 = vmpackc.low %vm610_vm8, %vm525_vm9  ;;  %v97_v59 = vsel %vm852_vm7, %v471_v44, %v472_v43 }
  0x82   :  { %v396_v50 = vpack.c.bf16 %v89_v48, %v564_v1  ;;  %392 = vmatprep.subr.msk.bf16.mxu0 %vm848_vm14, %v390_v47  ;;  %v475_v51 = vpop.permute.xlu0 %474  ;;  %vm44_vm14 = vmand %vm38_vm1, %vm595_vm3  ;;  %v399_v57 = vpack.c.bf16 %v88_v49, %v559_v0  ;;  %v111_v2 = vpop.permute.xlu1 %110 }
  0x83   :  { %v477_v54 = vunpack.i.h.bf16 %v475_v51  ;;  %v476_v55 = vunpack.i.l.bf16 %v475_v51  ;;  %vm731_vm7 = vmpackc.low %vm525_vm9, %vm589_vm0  ;;  %vm853_vm9 = vcmask 588800  }
  0x85   :  { %395 = vmatpush1.bf16.msk.msra.mxu0 %vm850_vm2, %v393_v52  ;;  %v107_v58 = vsel %vm851_vm5, %v477_v54, %v476_v55  ;;  %v106_v60 = vsel %vm851_vm5, %v476_v55, %v477_v54  ;;  %vm719_vm2 = vmpackc.low %vm38_vm1, %vm44_vm14  ;;  %vm854_vm5 = vcmp.lt.s32.totalorder %v582_v7, 111 }
  0x86   :  { %v402_v61 = vpack.c.bf16 %v107_v58, %v98_v53  ;;  %398 = vmatprep.subr.msk.bf16.mxu0 %vm688_vm13, %v396_v50  ;;  %v113_v3 = vpop.permute.xlu0 %112  ;;  %v405_v4 = vpack.c.bf16 %v106_v60, %v97_v59  ;;  %vm741_vm14 = vmand %vm38_vm1, %vm610_vm8  ;;  %vm881_vm1 = vcmp.lt.s32.totalorder %v582_v7, 16 }
  0x87   :  { %v116_v6 = vsel %vm854_vm5, %v113_v3, %v111_v2  ;;  %v115_v10 = vsel %vm854_vm5, %v111_v2, %v113_v3  ;;  %vm883_vm5 = vcmp.lt.s32.totalorder %v582_v7, 1 }
  0x89   :  { %401 = vmatpush1.bf16.msk.msra.mxu0 %vm713_vm6, %v399_v57 }
  0x8a   :  { %404 = vmatprep.subr.msk.bf16.mxu0 %vm719_vm2, %v402_v61 }
  0x8d   :  { %407 = vmatpush1.bf16.msk.msra.mxu0 %vm731_vm7, %v405_v4 }
  0x8e   :  { %366 = vmatprep.subr.msk.mxu0 %vm741_vm14, %v116_v6 }
  0x91   :  { %367 = vmatpush1.msk.msra.mxu0 %vm625_vm11, %v115_v10 }
  0x92   :  { %368 = vmatmul.mubr.msk.f32.vlgmr.msra.gmra.mrb[0].mxu0 %vm853_vm9, %v22_v11  ;;  %vm882_vm9 = vmmov %vm881_vm1 }
  0x93   :  { %v122_v8 = vpop.permute.xlu1 %121 }
 0x165   :  { %v194_v12 = vpop.f32.mrb[0].mxu0 }
 0x166   :  { %v195_v14 = vadd.f32 %v194_v12, %v122_v8  ;;  %v196_v15 = vpop.f32.mrb[1].mxu0 }
 0x167   :  { %v197_v16 = vadd.f32 %v196_v15, %v122_v8 }
 0x168   :  { %v199_v17 = vmax.f32 %v195_v14, 0.0 }
 0x169   :  { %v200_v19 = vmax.f32 %v197_v16, 0.0 }
 0x16b   :  { %v484_v20 = vpack.i.bf16 %v200_v19, %v199_v17 }
 0x16d   :  { %485 = vrot.lane.b32.xlu1 %v484_v20, %s518_s25  ;;  %480 = vrot.lane.b32.xlu0 %v484_v20, %s516_s23 }
 0x171   :  { %495 = vrot.lane.b32.xlu1 %v484_v20, %s517_s24  ;;  %490 = vrot.lane.b32.xlu0 %v484_v20, %s515_s22 }
 0x175   :  { %505 = vrot.lane.b32.xlu1 %v484_v20, %s520_s0  ;;  %500 = vrot.lane.b32.xlu0 %v484_v20, %s519_s26 }
 0x179   :  { %257 = vrot.lane.b32.xlu1 %v199_v17, %s522_s28  ;;  %510 = vrot.lane.b32.xlu0 %v484_v20, %s521_s27 }
 0x17d   :  { %267 = vperm.xlu1 %478, %v25_v21   ;;  %259 = vrot.lane.b32.xlu0 %v200_v19, %s522_s28 }
 0x1df   :  { %v486_v23 = vpop.permute.xlu1 %485  ;;  %v481_v24 = vpop.permute.xlu0 %480 }
 0x1e0   :  { %v488_v25 = vunpack.i.h.bf16 %v486_v23  ;;  %v487_v26 = vunpack.i.l.bf16 %v486_v23  ;;  %v483_v27 = vunpack.i.h.bf16 %v481_v24  ;;  %v482_v28 = vunpack.i.l.bf16 %v481_v24 }
 0x1e2   :  { %v205_v31 = vsel %vm51_vm4, %v482_v28, %v483_v27  ;;  %v213_v32 = vsel %vm881_vm1, %v487_v26, %v488_v25  ;;  %v206_v33 = vsel %vm51_vm4, %v483_v27, %v482_v28  ;;  %v214_v34 = vsel %vm882_vm9, %v488_v25, %v487_v26  ;;  %vm884_vm1 = vmmov %vm883_vm5 }
 0x1e3   :  { %v496_v36 = vpop.permute.xlu1 %495  ;;  %v491_v37 = vpop.permute.xlu0 %490  ;;  %v408_v38 = vpack.c.bf16 %v213_v32, %v205_v31  ;;  %v411_v39 = vpack.c.bf16 %v214_v34, %v206_v33  ;;  %vm885_vm4 = vcmp.lt.s32.totalorder %v582_v7, 15 }
 0x1e4   :  { %v498_v40 = vunpack.i.h.bf16 %v496_v36  ;;  %v497_v41 = vunpack.i.l.bf16 %v496_v36  ;;  %v493_v43 = vunpack.i.h.bf16 %v491_v37  ;;  %v492_v44 = vunpack.i.l.bf16 %v491_v37  ;;  %vm886_vm9 = vmmov %vm885_vm4 }
 0x1e5   :  { %410 = vmatprep.subr.msk.bf16.mxu1 %vm621_vm10, %v408_v38  ;;  %vm888_vm10 = vcmp.lt.s32.totalorder %v582_v7, 127 }
 0x1e6   :  { %v229_v45 = vsel %vm883_vm5, %v497_v41, %v498_v40  ;;  %v230_v46 = vsel %vm884_vm1, %v498_v40, %v497_v41  ;;  %v221_v47 = vsel %vm885_vm4, %v492_v44, %v493_v43  ;;  %v222_v48 = vsel %vm886_vm9, %v493_v43, %v492_v44  ;;  %413 = vmatpush1.bf16.msk.msra.mxu1 %vm641_vm12, %v411_v39  ;;  %vm887_vm5 = vmpackc.low %vm595_vm3, %vm610_vm8 }
 0x1e7   :  { %v414_v49 = vpack.c.bf16 %v229_v45, %v221_v47  ;;  %v417_v50 = vpack.c.bf16 %v230_v46, %v222_v48  ;;  %v506_v51 = vpop.permute.xlu1 %505  ;;  %v501_v29 = vpop.permute.xlu0 %500  ;;  %vm889_vm1 = vmmov %vm888_vm10  ;;  %vm891_vm3 = vcmp.lt.s32.totalorder %v582_v7, 113  ;;  %vm893_vm4 = vcmp.lt.s32.totalorder %v582_v7, 112 }
 0x1e8   :  { %v503_v52 = vunpack.i.h.bf16 %v501_v29  ;;  %v502_v53 = vunpack.i.l.bf16 %v501_v29  ;;  %v508_v54 = vunpack.i.h.bf16 %v506_v51  ;;  %v507_v55 = vunpack.i.l.bf16 %v506_v51  ;;  %vm890_vm12 = vmpackc.low %vm589_vm0, %vm654_vm15 }
 0x1e9   :  { %416 = vmatprep.subr.msk.bf16.mxu1 %vm887_vm5, %v414_v49  ;;  %vm892_vm8 = vmmov %vm891_vm3 }
 0x1ea   :  { %v237_v57 = vsel %vm888_vm10, %v502_v53, %v503_v52  ;;  %v238_v35 = vsel %vm889_vm1, %v503_v52, %v502_v53  ;;  %419 = vmatpush1.bf16.msk.msra.mxu1 %vm890_vm12, %v417_v50  ;;  %v245_v61 = vsel %vm891_vm3, %v507_v55, %v508_v54  ;;  %v246_v2 = vsel %vm892_vm8, %v508_v54, %v507_v55  ;;  %vm894_vm0 = vmmov %vm893_vm4 }
 0x1eb   :  { %v420_v58 = vpack.c.bf16 %v238_v35, %v200_v19  ;;  %v423_v18 = vpack.c.bf16 %v237_v57, %v199_v17  ;;  %v511_v59 = vpop.permute.xlu0 %510  ;;  %v258_v56 = vpop.permute.xlu1 %257 }
 0x1ec   :  { %v513_v22 = vunpack.i.h.bf16 %v511_v59  ;;  %v512_v60 = vunpack.i.l.bf16 %v511_v59 }
 0x1ed   :  { %422 = vmatprep.subr.msk.bf16.mxu1 %vm688_vm13, %v420_v58  ;;  %vm895_vm13 = vcmp.lt.s32.totalorder %v582_v7, 111 }
 0x1ee   :  { %v253_v13 = vsel %vm893_vm4, %v512_v60, %v513_v22  ;;  %v254_v42 = vsel %vm894_vm0, %v513_v22, %v512_v60  ;;  %425 = vmatpush1.bf16.msk.msra.mxu1 %vm713_vm6, %v423_v18  ;;  %vm896_vm6 = vmmov %vm895_vm13 }
 0x1ef   :  { %v426_v3 = vpack.c.bf16 %v254_v42, %v246_v2  ;;  %v429_v4 = vpack.c.bf16 %v253_v13, %v245_v61  ;;  %v260_v6 = vpop.permute.xlu0 %259 }
 0x1f0   :  { %v262_v10 = vsel %vm895_vm13, %v260_v6, %v258_v56  ;;  %v261_v11 = vsel %vm896_vm6, %v258_v56, %v260_v6 }
 0x1f1   :  { %428 = vmatprep.subr.msk.bf16.mxu1 %vm719_vm2, %v426_v3  ;;  %vm897_vm2 = vcmask 588800  }
 0x1f2   :  { %431 = vmatpush1.bf16.msk.msra.mxu1 %vm731_vm7, %v429_v4 }
 0x1f3   :  { %381 = vmatprep.subr.msk.mxu1 %vm741_vm14, %v262_v10 }
 0x1f6   :  { %382 = vmatpush1.msk.msra.mxu1 %vm625_vm11, %v261_v11 }
 0x1f7   :  { %383 = vmatmul.mubr.msk.f32.vlgmr.msra.gmra.mrb[0].mxu1 %vm897_vm2, %v23_v62 }
 0x1fc   :  { %v268_v63 = vpop.permute.xlu1 %267 }
 0x2ca   :  { %v339_v8 = vpop.f32.mrb[0].mxu1 }
 0x2cb   :  { %v340_v12 = vadd.f32 %v339_v8, %v268_v63  ;;  %v341_v5 = vpop.f32.mrb[1].mxu1 }
 0x2cc   :  { %v342_v14 = vadd.f32 %v341_v5, %v268_v63 }
 0x2cd   :  { %v344_v9 = vadd.f32 %v340_v12, %v559_v0 }
 0x2ce   :  { %v345_v15 = vadd.f32 %v342_v14, %v564_v1 }
 0x2cf   :  { %v346_v16 = vmax.f32 %v344_v9, 0.0 }
 0x2d0   :  { %v347_v17 = vmax.f32 %v345_v15, 0.0 }
 0x2d1   :  { %348 = vst [vmem:[%s844_s5] sm:$0xff] %v346_v16 }
 0x2d2   :  { %349 = vst [vmem:[%s844_s5 + $0x8] sm:$0xff] %v347_v17 }

</bundles_post_ra>
